<compile_context>
chip_gen: v7x
topology: tpu7x:2x2x1
jax: 0.10.0
libtpu: 0.0.40
codegen_flags: <defaults>
</compile_context>

<pallas_src>
import functools
import math

import jax
import jax.numpy as jnp
from jax import lax
from jax.experimental import pallas as pl
from jax.experimental.pallas import tpu as pltpu


# ----------------------------------------------------------------------------
# Tiling helpers
# ----------------------------------------------------------------------------
def _choose_block(n, target, mult=None):
    """Largest divisor of n that is <= target (and a multiple of `mult` if
    given).  Falls back to n itself (a full dimension is always legal)."""
    for d in range(min(n, target), 0, -1):
        if n % d == 0 and (mult is None or d % mult == 0):
            return d
    return n


def _choose_heads_per_block(n_head, head_size):
    """Heads processed per WKV grid step.  The lane width of the r/k/v/att
    blocks is heads_per_block * head_size, which must be a multiple of 128
    (lane-dense tiles) or cover the whole A dimension (heads_per_block == H)."""
    m = 128 // math.gcd(head_size, 128)
    best = None
    for d in range(1, n_head + 1):
        if n_head % d != 0 or d % m != 0:
            continue
        if d <= 8:
            best = d            # largest valid divisor <= 8 (bounded unroll)
        else:
            if best is None:
                best = d        # otherwise the smallest valid one
            break
    return best if best is not None else n_head


# ----------------------------------------------------------------------------
# Kernel 1: token-shift lerp + fused receptance/key/value/gate projections
# ----------------------------------------------------------------------------
def _proj_kernel(x_ref, xx_ref, mix_ref, w_ref, r_ref, k_ref, v_ref, g_ref):
    x = x_ref[0].astype(jnp.float32)             # (Tt, C)
    xx = xx_ref[0].astype(jnp.float32)           # (Tt, C)
    d = x - xx
    wdt = w_ref.dtype                            # bf16 weights -> bf16 MXU feed
    proj = []
    for n in range(4):                           # order: r, k, v, g
        xm = (xx + mix_ref[n] * d).astype(wdt)   # modified_lerp, cast once
        proj.append(jnp.dot(xm, w_ref[n], preferred_element_type=jnp.float32))
    r_ref[0] = proj[0].astype(r_ref.dtype)
    k_ref[0] = proj[1].astype(k_ref.dtype)
    v_ref[0] = proj[2].astype(v_ref.dtype)
    g = proj[3]
    g_ref[0] = (g * jax.nn.sigmoid(g)).astype(g_ref.dtype)   # SiLU gate


# ----------------------------------------------------------------------------
# Kernel 2: chunked-parallel WKV linear-attention recurrence
# ----------------------------------------------------------------------------
def _wkv_chunk_kernel(r_ref, k_ref, v_ref, wp_ref, wq_ref, wke_ref, wc_ref,
                      u_ref, s_in_ref, o_ref, s_out_ref, s_scr):
    c = pl.program_id(2)
    hpb, tc, K = wp_ref.shape                    # heads/block, chunk len, head size

    @pl.when(c == 0)
    def _():
        s_scr[...] = s_in_ref[0]                 # (hpb, K, K) f32 carried state

    r_all = r_ref[0].astype(jnp.float32)         # (Tc, hpb*K)
    k_all = k_ref[0].astype(jnp.float32)
    v_all = v_ref[0].astype(jnp.float32)
    wp = wp_ref[...]                             # (hpb, Tc, K)  w^t
    wq = wq_ref[...]                             # (hpb, Tc, K)  w^{-(t+1)}
    wke = wke_ref[...]                           # (hpb, Tc, K)  w^{Tc-1-t}
    wc = wc_ref[...]                             # (hpb, K, 1)   w^{Tc}
    u = u_ref[...]                               # (hpb, 1, K)

    ii = lax.broadcasted_iota(jnp.int32, (tc, tc), 0)
    jj = lax.broadcasted_iota(jnp.int32, (tc, tc), 1)
    lower = jj < ii                              # strictly lower triangular

    for h in range(hpb):                         # static unroll (hpb is small)
        base = h * K
        r_h = r_all[:, base:base + K]            # (Tc, K)
        k_h = k_all[:, base:base + K]
        v_h = v_all[:, base:base + K]
        s_h = s_scr[h]                           # (K, K) f32, key-dim first

        rw = r_h * wp[h]                         # r_t * w^t
        kq = k_h * wq[h]                         # k_s * w^{-(s+1)}
        scores = jnp.dot(rw, kq.T, preferred_element_type=jnp.float32)
        scores = jnp.where(lower, scores, 0.0)   # keep only s < t terms
        du = jnp.sum(r_h * u[h] * k_h, axis=-1, keepdims=True)   # diagonal (u) term

        o_h = (jnp.dot(scores, v_h, preferred_element_type=jnp.float32)
               + du * v_h
               + jnp.dot(rw, s_h, preferred_element_type=jnp.float32))
        o_ref[0, :, base:base + K] = o_h.astype(o_ref.dtype)

        ke = k_h * wke[h]                        # k_s * w^{Tc-1-s}
        s_scr[h] = wc[h] * s_h + jnp.dot(ke.T, v_h,
                                         preferred_element_type=jnp.float32)

    @pl.when(c == pl.num_programs(2) - 1)
    def _():
        s_out_ref[0] = s_scr[...]                # f32 state out (no bf16 round trip)


# ----------------------------------------------------------------------------
# Kernel 3: GroupNorm (n_head groups, two-pass variance) + gating + out proj
# ----------------------------------------------------------------------------
def _out_kernel(att_ref, g_ref, grp_ref, grpt_ref, lnw_ref, lnb_ref, wo_ref,
                o_ref, *, head_size, head_size_divisor, eps):
    xb = att_ref[0].astype(jnp.float32) * (1.0 / head_size_divisor)   # (Tt, A)
    grp = grp_ref[...]                           # (A, H) one-hot, f32 (exact)
    grpt = grpt_ref[...]                         # (H, A)
    inv_k = 1.0 / head_size

    mean = jnp.dot(xb, grp, preferred_element_type=jnp.float32) * inv_k      # (Tt, H)
    mean_b = jnp.dot(mean, grpt, preferred_element_type=jnp.float32)         # (Tt, A)
    xc = xb - mean_b
    var = jnp.dot(xc * xc, grp, preferred_element_type=jnp.float32) * inv_k  # (Tt, H)
    rstd_b = jnp.dot(lax.rsqrt(var + eps), grpt, preferred_element_type=jnp.float32)

    xn = xc * rstd_b * lnw_ref[...].astype(jnp.float32) + lnb_ref[...].astype(jnp.float32)
    y = (xn * g_ref[0].astype(jnp.float32)).astype(wo_ref.dtype)             # bf16 MXU feed
    o_ref[0] = jnp.dot(y, wo_ref[...],
                       preferred_element_type=jnp.float32).astype(o_ref.dtype)


# ----------------------------------------------------------------------------
# Forward wrapper
# ----------------------------------------------------------------------------
def rwkv5_time_mix_forward(params, x, shift_state_in, wkv_state_in,
                           n_head, head_size, head_size_divisor,
                           *, block_t=128, block_a=256, block_c=256,
                           chunk_t=64, vmem_limit_bytes=None):
    B, T, C = x.shape
    H, K = n_head, head_size
    A = H * K
    dtype = x.dtype

    shift_state_out = x[:, -1]
    xx = jnp.concatenate([shift_state_in[:, None, :], x[:, :-1]], axis=1)

    # ---- tiling -------------------------------------------------------------
    bt = _choose_block(T, block_t, 8)        # T tile, kernels 1 & 3
    ba = _choose_block(A, block_a, 128)      # output-column tile, kernel 1
    bc = _choose_block(C, block_c, 128)      # output-column tile, kernel 3
    tc = _choose_block(T, chunk_t, 8)        # WKV chunk length (falls back to T)
    hpb = _choose_heads_per_block(H, K)      # heads per WKV grid step
    bh = hpb * K                             # lane width of the WKV head block

    def cparams(sem):
        return pltpu.CompilerParams(dimension_semantics=sem,
                                    vmem_limit_bytes=vmem_limit_bytes)

    # ---- kernel 1: token-shift mix + fused R/K/V/G projections --------------
    wT = jnp.transpose                       # nn.Linear does x @ W^T
    wcat = jnp.stack([wT(params["receptance_w"]), wT(params["key_w"]),
                      wT(params["value_w"]), wT(params["gate_w"])])    # (4, C, A)
    mixcat = jnp.stack([params["time_mix_r"], params["time_mix_k"],
                        params["time_mix_v"], params["time_mix_g"]]
                       ).astype(jnp.float32).reshape(4, 1, C)

    r_bta, k_bta, v_bta, g_bta = pl.pallas_call(
        _proj_kernel,
        out_shape=tuple(jax.ShapeDtypeStruct((B, T, A), dtype) for _ in range(4)),
        grid=(B, T // bt, A // ba),
        in_specs=[
            pl.BlockSpec((1, bt, C), lambda b, t, a: (b, t, 0)),
            pl.BlockSpec((1, bt, C), lambda b, t, a: (b, t, 0)),
            pl.BlockSpec((4, 1, C), lambda b, t, a: (0, 0, 0)),
            pl.BlockSpec((4, C, ba), lambda b, t, a: (0, 0, a)),
        ],
        out_specs=[pl.BlockSpec((1, bt, ba), lambda b, t, a: (b, t, a))] * 4,
        compiler_params=cparams(("parallel", "parallel", "parallel")),
    )(x, xx, mixcat, wcat)

    # ---- kernel 2: chunked WKV recurrence ------------------------------------
    # w = exp(-exp(time_decay)); all chunk-position decay powers precomputed.
    logw = -jnp.exp(params["time_decay"].astype(jnp.float32))       # (H, K), log w < 0
    t_idx = jnp.arange(tc, dtype=jnp.float32)[None, :, None]        # (1, Tc, 1)
    lw = logw[:, None, :]                                           # (H, 1, K)
    wp = jnp.exp(lw * t_idx)                                        # w^t
    wq = jnp.exp(-lw * (t_idx + 1.0))                               # w^{-(t+1)}
    wke = jnp.exp(lw * (float(tc) - 1.0 - t_idx))                   # w^{Tc-1-t}
    wc = jnp.exp(logw * float(tc))[:, :, None]                      # (H, K, 1)   w^{Tc}
    u = params["time_faaaa"].astype(jnp.float32)[:, None, :]        # (H, 1, K)

    att_bta, wkv_state_out = pl.pallas_call(
        _wkv_chunk_kernel,
        out_shape=(jax.ShapeDtypeStruct((B, T, A), dtype),
                   jax.ShapeDtypeStruct((B, H, K, K), jnp.float32)),
        grid=(B, H // hpb, T // tc),
        in_specs=[
            pl.BlockSpec((1, tc, bh), lambda b, h, c: (b, c, h)),      # r
            pl.BlockSpec((1, tc, bh), lambda b, h, c: (b, c, h)),      # k
            pl.BlockSpec((1, tc, bh), lambda b, h, c: (b, c, h)),      # v
            pl.BlockSpec((hpb, tc, K), lambda b, h, c: (h, 0, 0)),     # w^t
            pl.BlockSpec((hpb, tc, K), lambda b, h, c: (h, 0, 0)),     # w^{-(t+1)}
            pl.BlockSpec((hpb, tc, K), lambda b, h, c: (h, 0, 0)),     # w^{Tc-1-t}
            pl.BlockSpec((hpb, K, 1), lambda b, h, c: (h, 0, 0)),      # w^{Tc}
            pl.BlockSpec((hpb, 1, K), lambda b, h, c: (h, 0, 0)),      # u
            pl.BlockSpec((1, hpb, K, K), lambda b, h, c: (b, h, 0, 0)),  # state in
        ],
        out_specs=[
            pl.BlockSpec((1, tc, bh), lambda b, h, c: (b, c, h)),
            pl.BlockSpec((1, hpb, K, K), lambda b, h, c: (b, h, 0, 0)),
        ],
        scratch_shapes=[pltpu.VMEM((hpb, K, K), jnp.float32)],
        compiler_params=cparams(("parallel", "parallel", "arbitrary")),
    )(r_bta, k_bta, v_bta, wp, wq, wke, wc, u,
      wkv_state_in.astype(jnp.float32))

    # ---- kernel 3: GroupNorm + gating + output projection --------------------
    grp = jnp.repeat(jnp.eye(H, dtype=jnp.float32), K, axis=0)      # (A, H) one-hot
    x_out = pl.pallas_call(
        functools.partial(_out_kernel, head_size=K,
                          head_size_divisor=float(head_size_divisor), eps=1e-5),
        out_shape=jax.ShapeDtypeStruct((B, T, C), dtype),
        grid=(B, T // bt, C // bc),
        in_specs=[
            pl.BlockSpec((1, bt, A), lambda b, t, c: (b, t, 0)),
            pl.BlockSpec((1, bt, A), lambda b, t, c: (b, t, 0)),
            pl.BlockSpec((A, H), lambda b, t, c: (0, 0)),
            pl.BlockSpec((H, A), lambda b, t, c: (0, 0)),
            pl.BlockSpec((1, A), lambda b, t, c: (0, 0)),
            pl.BlockSpec((1, A), lambda b, t, c: (0, 0)),
            pl.BlockSpec((A, bc), lambda b, t, c: (0, c)),
        ],
        out_specs=pl.BlockSpec((1, bt, bc), lambda b, t, c: (b, t, c)),
        compiler_params=cparams(("parallel", "parallel", "parallel")),
    )(att_bta, g_bta, grp, jnp.transpose(grp),
      params["ln_x_w"].reshape(1, A), params["ln_x_b"].reshape(1, A),
      wT(params["output_w"]))

    return x_out, shift_state_out, wkv_state_out


# ----------------------------------------------------------------------------
# Pure-JAX f32 per-timestep reference (mirrors the PyTorch module) for checking
# ----------------------------------------------------------------------------
def _reference_forward(params, x, shift_state_in, wkv_state_in,
                       n_head, head_size, head_size_divisor):
    B, T, C = x.shape
    H, K = n_head, head_size
    A = H * K
    f32 = jnp.float32

    xf = x.astype(f32)
    xx = jnp.concatenate([shift_state_in[:, None, :].astype(f32), xf[:, :-1]], axis=1)

    def mix(m):
        m = m.astype(f32).reshape(1, 1, C)
        return xf * m + xx * (1.0 - m)

    wT = lambda w: w.astype(f32).T
    r = mix(params["time_mix_r"]) @ wT(params["receptance_w"])
    k = mix(params["time_mix_k"]) @ wT(params["key_w"])
    v = mix(params["time_mix_v"]) @ wT(params["value_w"])
    gg = mix(params["time_mix_g"]) @ wT(params["gate_w"])
    g = gg * jax.nn.sigmoid(gg)

    r = r.reshape(B, T, H, K)
    k = k.reshape(B, T, H, K)
    v = v.reshape(B, T, H, K)
    w = jnp.exp(-jnp.exp(params["time_decay"].astype(f32)))        # (H, K)
    u = params["time_faaaa"].astype(f32)                           # (H, K)

    s = wkv_state_in.astype(f32)                                   # (B, H, K, K)
    outs = []
    for t in range(T):
        rt, kt, vt = r[:, t], k[:, t], v[:, t]                     # (B, H, K)
        at = kt[..., :, None] * vt[..., None, :]                   # (B, H, K, K)
        outs.append(jnp.einsum('bhk,bhkl->bhl', rt,
                               u[None, :, :, None] * at + s))
        s = at + w[None, :, :, None] * s
    att = jnp.stack(outs, axis=1).reshape(B, T, A)

    xb = (att / head_size_divisor).reshape(B, T, H, K)
    mean = xb.mean(-1, keepdims=True)
    var = xb.var(-1, keepdims=True)
    xn = (xb - mean) * lax.rsqrt(var + 1e-5)
    xn = xn.reshape(B, T, A) * params["ln_x_w"].astype(f32) + params["ln_x_b"].astype(f32)
    out = (xn * g) @ wT(params["output_w"])
    return out, x[:, -1], s


# ----------------------------------------------------------------------------
# Deterministic parameter init (mirrors RWKV5TimeMix.__init__ formulas)
# ----------------------------------------------------------------------------
def init_params(key, hidden_size, n_head, head_size, num_hidden_layers,
                layer_id, dtype):
    H, K = n_head, head_size
    A = H * K
    r01 = layer_id / (num_hidden_layers - 1)
    r1a0 = 1.0 - layer_id / num_hidden_layers

    ddd = jnp.arange(hidden_size, dtype=jnp.float32) / hidden_size
    time_mix_k = ddd ** r1a0
    time_mix_v = ddd ** r1a0 + 0.3 * r01
    time_mix_r = ddd ** (0.5 * r1a0)
    time_mix_g = ddd ** (0.5 * r1a0)

    n = jnp.arange(A, dtype=jnp.float32)
    decay_speed = -6.0 + 5.0 * (n / (A - 1)) ** (0.7 + 1.3 * r01)
    zigzag = ((n + 1) % 3 - 1) * 0.1
    time_faaaa = r01 * (1.0 - n / (A - 1)) + zigzag

    ks = jax.random.split(key, 5)

    def lin(k_, out_f, in_f):
        return (jax.random.normal(k_, (out_f, in_f), jnp.float32) * 0.02).astype(dtype)

    return dict(
        time_mix_k=time_mix_k.astype(dtype),
        time_mix_v=time_mix_v.astype(dtype),
        time_mix_r=time_mix_r.astype(dtype),
        time_mix_g=time_mix_g.astype(dtype),
        time_decay=decay_speed.reshape(H, K).astype(dtype),
        time_faaaa=time_faaaa.reshape(H, K).astype(dtype),
        receptance_w=lin(ks[0], A, hidden_size),
        key_w=lin(ks[1], A, hidden_size),
        value_w=lin(ks[2], A, hidden_size),
        gate_w=lin(ks[3], A, hidden_size),
        output_w=lin(ks[4], hidden_size, A),
        ln_x_w=jnp.ones((A,), dtype),
        ln_x_b=jnp.zeros((A,), dtype),
    )


if __name__ == "__main__":
    B, T = 2, 8
    hidden_size = 32
    n_head, head_size = 4, 8
    num_hidden_layers, layer_id = 4, 1
    head_size_divisor = 8.0
    dtype = jnp.bfloat16

    key = jax.random.PRNGKey(0)
    kp, kx, ksh, kw = jax.random.split(key, 4)
    params = init_params(kp, hidden_size, n_head, head_size,
                         num_hidden_layers, layer_id, dtype)

    x = jax.random.normal(kx, (B, T, hidden_size), jnp.float32).astype(dtype)
    shift_state_in = jax.random.normal(ksh, (B, hidden_size), jnp.float32).astype(dtype)
    wkv_state_in = (jax.random.normal(kw, (B, n_head, head_size, head_size),
                                      jnp.float32) * 0.1).astype(dtype)

    out_x, shift_state_out, wkv_state_out = rwkv5_time_mix_forward(
        params, x, shift_state_in, wkv_state_in,
        n_head, head_size, head_size_divisor)
    jax.block_until_ready((out_x, shift_state_out, wkv_state_out))

    assert out_x.shape == (B, T, hidden_size)
    assert shift_state_out.shape == (B, hidden_size)
    assert wkv_state_out.shape == (B, n_head, head_size, head_size)

    # Sanity check against a pure-JAX f32 per-timestep reference (loose
    # tolerances: the kernels store r/k/v/g/att in bf16 like the module).
    ref_x, ref_shift, ref_state = _reference_forward(
        params, x, shift_state_in, wkv_state_in,
        n_head, head_size, head_size_divisor)

    def rel_err(a, b):
        a = jnp.asarray(a, jnp.float32)
        b = jnp.asarray(b, jnp.float32)
        return float(jnp.max(jnp.abs(a - b)) / (jnp.max(jnp.abs(b)) + 1e-6))

    assert rel_err(shift_state_out, ref_shift) < 1e-3
    assert rel_err(wkv_state_out, ref_state) < 5e-2, rel_err(wkv_state_out, ref_state)
    assert rel_err(out_x, ref_x) < 1e-1, rel_err(out_x, ref_x)

    print("KERNEL_OK")
</pallas_src>

<mosaic_0001>
module attributes {stable_mosaic.version = 11 : i64} {
  func.func @_proj_kernel(%arg0: i32, %arg1: i32, %arg2: i32, %arg3: memref<1x8x32xbf16, #tpu.memory_space<vmem>>, %arg4: memref<1x8x32xbf16, #tpu.memory_space<vmem>>, %arg5: memref<4x1x32xf32, #tpu.memory_space<vmem>>, %arg6: memref<4x32x32xbf16, #tpu.memory_space<vmem>>, %arg7: memref<1x8x32xbf16, #tpu.memory_space<vmem>>, %arg8: memref<1x8x32xbf16, #tpu.memory_space<vmem>>, %arg9: memref<1x8x32xbf16, #tpu.memory_space<vmem>>, %arg10: memref<1x8x32xbf16, #tpu.memory_space<vmem>>) attributes {dimension_semantics = [#tpu.dimension_semantics<parallel>, #tpu.dimension_semantics<parallel>, #tpu.dimension_semantics<parallel>], iteration_bounds = array<i64: 2, 1, 1>, scalar_prefetch = 0 : i64, scratch_operands = 0 : i64, tpu.core_type = #tpu.core_type<tc>, window_params = [{transform_indices = @transform_0, window_bounds = array<i64: 1, 8, 32>}, {transform_indices = @transform_1, window_bounds = array<i64: 1, 8, 32>}, {pipeline_mode = #tpu.pipeline_mode<synchronous>, transform_indices = @transform_2, window_bounds = array<i64: 4, 1, 32>}, {transform_indices = @transform_3, window_bounds = array<i64: 4, 32, 32>}, {transform_indices = @transform_4, window_bounds = array<i64: 1, 8, 32>}, {transform_indices = @transform_5, window_bounds = array<i64: 1, 8, 32>}, {transform_indices = @transform_6, window_bounds = array<i64: 1, 8, 32>}, {transform_indices = @transform_7, window_bounds = array<i64: 1, 8, 32>}]} {
    %c0 = arith.constant 0 : index
    %c0_0 = arith.constant 0 : index
    %c0_1 = arith.constant 0 : index
    %0 = vector.load %arg3[%c0, %c0_0, %c0_1] : memref<1x8x32xbf16, #tpu.memory_space<vmem>>, vector<1x8x32xbf16>
    %1 = vector.shape_cast %0 : vector<1x8x32xbf16> to vector<8x32xbf16>
    %2 = arith.extf %1 : vector<8x32xbf16> to vector<8x32xf32>
    %c0_2 = arith.constant 0 : index
    %c0_3 = arith.constant 0 : index
    %c0_4 = arith.constant 0 : index
    %3 = vector.load %arg4[%c0_2, %c0_3, %c0_4] : memref<1x8x32xbf16, #tpu.memory_space<vmem>>, vector<1x8x32xbf16>
    %4 = vector.shape_cast %3 : vector<1x8x32xbf16> to vector<8x32xbf16>
    %5 = arith.extf %4 : vector<8x32xbf16> to vector<8x32xf32>
    %6 = arith.subf %2, %5 : vector<8x32xf32>
    %c0_5 = arith.constant 0 : index
    %c0_6 = arith.constant 0 : index
    %c0_7 = arith.constant 0 : index
    %7 = vector.load %arg5[%c0_5, %c0_6, %c0_7] : memref<4x1x32xf32, #tpu.memory_space<vmem>>, vector<1x1x32xf32>
    %8 = vector.shape_cast %7 : vector<1x1x32xf32> to vector<1x32xf32>
    %9 = vector.broadcast %8 : vector<1x32xf32> to vector<8x32xf32>
    %10 = arith.mulf %9, %6 : vector<8x32xf32>
    %11 = arith.addf %5, %10 : vector<8x32xf32>
    %12 = arith.truncf %11 : vector<8x32xf32> to vector<8x32xbf16>
    %c0_8 = arith.constant 0 : index
    %c0_9 = arith.constant 0 : index
    %c0_10 = arith.constant 0 : index
    %13 = vector.load %arg6[%c0_8, %c0_9, %c0_10] : memref<4x32x32xbf16, #tpu.memory_space<vmem>>, vector<1x32x32xbf16>
    %14 = vector.shape_cast %13 : vector<1x32x32xbf16> to vector<32x32xbf16>
    %cst = arith.constant dense<0.000000e+00> : vector<8x32xf32>
    %15 = tpu.matmul %12, %14, %cst {dimension_numbers = #tpu.dot_dimension_numbers<[1], [0], [0], [1], [0, 0, 1, 1], [], []>} : vector<8x32xbf16>, vector<32x32xbf16>, vector<8x32xf32> -> vector<8x32xf32>
    %c1 = arith.constant 1 : index
    %c0_11 = arith.constant 0 : index
    %c0_12 = arith.constant 0 : index
    %16 = vector.load %arg5[%c1, %c0_11, %c0_12] : memref<4x1x32xf32, #tpu.memory_space<vmem>>, vector<1x1x32xf32>
    %17 = vector.shape_cast %16 : vector<1x1x32xf32> to vector<1x32xf32>
    %18 = vector.broadcast %17 : vector<1x32xf32> to vector<8x32xf32>
    %19 = arith.mulf %18, %6 : vector<8x32xf32>
    %20 = arith.addf %5, %19 : vector<8x32xf32>
    %21 = arith.truncf %20 : vector<8x32xf32> to vector<8x32xbf16>
    %c1_13 = arith.constant 1 : index
    %c0_14 = arith.constant 0 : index
    %c0_15 = arith.constant 0 : index
    %22 = vector.load %arg6[%c1_13, %c0_14, %c0_15] : memref<4x32x32xbf16, #tpu.memory_space<vmem>>, vector<1x32x32xbf16>
    %23 = vector.shape_cast %22 : vector<1x32x32xbf16> to vector<32x32xbf16>
    %cst_16 = arith.constant dense<0.000000e+00> : vector<8x32xf32>
    %24 = tpu.matmul %21, %23, %cst_16 {dimension_numbers = #tpu.dot_dimension_numbers<[1], [0], [0], [1], [0, 0, 1, 1], [], []>} : vector<8x32xbf16>, vector<32x32xbf16>, vector<8x32xf32> -> vector<8x32xf32>
    %c2 = arith.constant 2 : index
    %c0_17 = arith.constant 0 : index
    %c0_18 = arith.constant 0 : index
    %25 = vector.load %arg5[%c2, %c0_17, %c0_18] : memref<4x1x32xf32, #tpu.memory_space<vmem>>, vector<1x1x32xf32>
    %26 = vector.shape_cast %25 : vector<1x1x32xf32> to vector<1x32xf32>
    %27 = vector.broadcast %26 : vector<1x32xf32> to vector<8x32xf32>
    %28 = arith.mulf %27, %6 : vector<8x32xf32>
    %29 = arith.addf %5, %28 : vector<8x32xf32>
    %30 = arith.truncf %29 : vector<8x32xf32> to vector<8x32xbf16>
    %c2_19 = arith.constant 2 : index
    %c0_20 = arith.constant 0 : index
    %c0_21 = arith.constant 0 : index
    %31 = vector.load %arg6[%c2_19, %c0_20, %c0_21] : memref<4x32x32xbf16, #tpu.memory_space<vmem>>, vector<1x32x32xbf16>
    %32 = vector.shape_cast %31 : vector<1x32x32xbf16> to vector<32x32xbf16>
    %cst_22 = arith.constant dense<0.000000e+00> : vector<8x32xf32>
    %33 = tpu.matmul %30, %32, %cst_22 {dimension_numbers = #tpu.dot_dimension_numbers<[1], [0], [0], [1], [0, 0, 1, 1], [], []>} : vector<8x32xbf16>, vector<32x32xbf16>, vector<8x32xf32> -> vector<8x32xf32>
    %c3 = arith.constant 3 : index
    %c0_23 = arith.constant 0 : index
    %c0_24 = arith.constant 0 : index
    %34 = vector.load %arg5[%c3, %c0_23, %c0_24] : memref<4x1x32xf32, #tpu.memory_space<vmem>>, vector<1x1x32xf32>
    %35 = vector.shape_cast %34 : vector<1x1x32xf32> to vector<1x32xf32>
    %36 = vector.broadcast %35 : vector<1x32xf32> to vector<8x32xf32>
    %37 = arith.mulf %36, %6 : vector<8x32xf32>
    %38 = arith.addf %5, %37 : vector<8x32xf32>
    %39 = arith.truncf %38 : vector<8x32xf32> to vector<8x32xbf16>
    %c3_25 = arith.constant 3 : index
    %c0_26 = arith.constant 0 : index
    %c0_27 = arith.constant 0 : index
    %40 = vector.load %arg6[%c3_25, %c0_26, %c0_27] : memref<4x32x32xbf16, #tpu.memory_space<vmem>>, vector<1x32x32xbf16>
    %41 = vector.shape_cast %40 : vector<1x32x32xbf16> to vector<32x32xbf16>
    %cst_28 = arith.constant dense<0.000000e+00> : vector<8x32xf32>
    %42 = tpu.matmul %39, %41, %cst_28 {dimension_numbers = #tpu.dot_dimension_numbers<[1], [0], [0], [1], [0, 0, 1, 1], [], []>} : vector<8x32xbf16>, vector<32x32xbf16>, vector<8x32xf32> -> vector<8x32xf32>
    %43 = arith.truncf %15 : vector<8x32xf32> to vector<8x32xbf16>
    %c0_29 = arith.constant 0 : index
    %c0_30 = arith.constant 0 : index
    %c0_31 = arith.constant 0 : index
    %44 = vector.load %arg7[%c0_29, %c0_30, %c0_31] : memref<1x8x32xbf16, #tpu.memory_space<vmem>>, vector<1x8x32xbf16>
    %45 = vector.shape_cast %44 : vector<1x8x32xbf16> to vector<8x32xbf16>
    %46 = vector.shape_cast %43 : vector<8x32xbf16> to vector<1x8x32xbf16>
    tpu.vector_store %arg7[%c0_29, %c0_30, %c0_31], %46 {strides = array<i32>} : memref<1x8x32xbf16, #tpu.memory_space<vmem>>, vector<1x8x32xbf16>,
    %47 = arith.truncf %24 : vector<8x32xf32> to vector<8x32xbf16>
    %c0_32 = arith.constant 0 : index
    %c0_33 = arith.constant 0 : index
    %c0_34 = arith.constant 0 : index
    %48 = vector.load %arg8[%c0_32, %c0_33, %c0_34] : memref<1x8x32xbf16, #tpu.memory_space<vmem>>, vector<1x8x32xbf16>
    %49 = vector.shape_cast %48 : vector<1x8x32xbf16> to vector<8x32xbf16>
    %50 = vector.shape_cast %47 : vector<8x32xbf16> to vector<1x8x32xbf16>
    tpu.vector_store %arg8[%c0_32, %c0_33, %c0_34], %50 {strides = array<i32>} : memref<1x8x32xbf16, #tpu.memory_space<vmem>>, vector<1x8x32xbf16>,
    %51 = arith.truncf %33 : vector<8x32xf32> to vector<8x32xbf16>
    %c0_35 = arith.constant 0 : index
    %c0_36 = arith.constant 0 : index
    %c0_37 = arith.constant 0 : index
    %52 = vector.load %arg9[%c0_35, %c0_36, %c0_37] : memref<1x8x32xbf16, #tpu.memory_space<vmem>>, vector<1x8x32xbf16>
    %53 = vector.shape_cast %52 : vector<1x8x32xbf16> to vector<8x32xbf16>
    %54 = vector.shape_cast %51 : vector<8x32xbf16> to vector<1x8x32xbf16>
    tpu.vector_store %arg9[%c0_35, %c0_36, %c0_37], %54 {strides = array<i32>} : memref<1x8x32xbf16, #tpu.memory_space<vmem>>, vector<1x8x32xbf16>,
    %55 = arith.negf %42 : vector<8x32xf32>
    %56 = math.exp %55 : vector<8x32xf32>
    %cst_38 = arith.constant 1.000000e+00 : f32
    %57 = vector.broadcast %cst_38 : f32 to vector<8x32xf32>
    %58 = arith.addf %57, %56 : vector<8x32xf32>
    %59 = arith.divf %57, %58 : vector<8x32xf32>
    %60 = arith.mulf %42, %59 : vector<8x32xf32>
    %61 = arith.truncf %60 : vector<8x32xf32> to vector<8x32xbf16>
    %c0_39 = arith.constant 0 : index
    %c0_40 = arith.constant 0 : index
    %c0_41 = arith.constant 0 : index
    %62 = vector.load %arg10[%c0_39, %c0_40, %c0_41] : memref<1x8x32xbf16, #tpu.memory_space<vmem>>, vector<1x8x32xbf16>
    %63 = vector.shape_cast %62 : vector<1x8x32xbf16> to vector<8x32xbf16>
    %64 = vector.shape_cast %61 : vector<8x32xbf16> to vector<1x8x32xbf16>
    tpu.vector_store %arg10[%c0_39, %c0_40, %c0_41], %64 {strides = array<i32>} : memref<1x8x32xbf16, #tpu.memory_space<vmem>>, vector<1x8x32xbf16>,
    return
  }
  func.func @transform_0(%arg0: i32, %arg1: i32, %arg2: i32) -> (i32, i32, i32) {
    %c0_i32 = arith.constant 0 : i32
    %c0_i32_0 = arith.constant 0 : i32
    return %arg0, %arg1, %c0_i32 : i32, i32, i32
  }
  func.func @transform_1(%arg0: i32, %arg1: i32, %arg2: i32) -> (i32, i32, i32) {
    %c0_i32 = arith.constant 0 : i32
    %c0_i32_0 = arith.constant 0 : i32
    return %arg0, %arg1, %c0_i32 : i32, i32, i32
  }
  func.func @transform_2(%arg0: i32, %arg1: i32, %arg2: i32) -> (i32, i32, i32) {
    %c0_i32 = arith.constant 0 : i32
    %c0_i32_0 = arith.constant 0 : i32
    %c0_i32_1 = arith.constant 0 : i32
    %c0_i32_2 = arith.constant 0 : i32
    return %c0_i32, %c0_i32_0, %c0_i32_1 : i32, i32, i32
  }
  func.func @transform_3(%arg0: i32, %arg1: i32, %arg2: i32) -> (i32, i32, i32) {
    %c0_i32 = arith.constant 0 : i32
    %c0_i32_0 = arith.constant 0 : i32
    %c0_i32_1 = arith.constant 0 : i32
    return %c0_i32, %c0_i32_0, %arg2 : i32, i32, i32
  }
  func.func @transform_4(%arg0: i32, %arg1: i32, %arg2: i32) -> (i32, i32, i32) {
    %c0_i32 = arith.constant 0 : i32
    return %arg0, %arg1, %arg2 : i32, i32, i32
  }
  func.func @transform_5(%arg0: i32, %arg1: i32, %arg2: i32) -> (i32, i32, i32) {
    %c0_i32 = arith.constant 0 : i32
    return %arg0, %arg1, %arg2 : i32, i32, i32
  }
  func.func @transform_6(%arg0: i32, %arg1: i32, %arg2: i32) -> (i32, i32, i32) {
    %c0_i32 = arith.constant 0 : i32
    return %arg0, %arg1, %arg2 : i32, i32, i32
  }
  func.func @transform_7(%arg0: i32, %arg1: i32, %arg2: i32) -> (i32, i32, i32) {
    %c0_i32 = arith.constant 0 : i32
    return %arg0, %arg1, %arg2 : i32, i32, i32
  }
}

</mosaic_0001>

<bundles_post_ra>
// kernel: tpu_custom_call.1
= control target key start
LH: loop header
LB: loop body
LE: loop exit
PB: predicated region body
PF: predicated region fallthrough
CT: control target
= control target key end

     0   :  { %s1928_s0 = inlined_call_operand.hbm [shape: bf16[2,8,32], index: 0, kind: input, shape index: {}]   ;;  %s1929_s1 = inlined_call_operand.hbm [shape: bf16[2,8,32], index: 1, kind: input, shape index: {}]   ;;  %s1930_s2 = inlined_call_operand.vmem [shape: f32[4,1,32], index: 2, kind: input, shape index: {}]   ;;  %s1931_s3 = inlined_call_operand.hbm [shape: bf16[4,32,32], index: 3, kind: input, shape index: {}]   ;;  %s1932_s4 = inlined_call_operand.hbm [shape: bf16[2,8,32], index: 4, kind: output, shape index: {0}]   ;;  %s1933_s5 = inlined_call_operand.hbm [shape: bf16[2,8,32], index: 5, kind: output, shape index: {1}]   ;;  %s1934_s6 = inlined_call_operand.hbm [shape: bf16[2,8,32], index: 6, kind: output, shape index: {2}]   ;;  %s1935_s7 = inlined_call_operand.hbm [shape: bf16[2,8,32], index: 7, kind: output, shape index: {3}]  }
   0x1   :  { %1945 = sst [smem:[#allocation25_spill]] %s1931_s3 }
   0x2   :  { %13 = vsyncpa [#allocation3], 0 }
   0x3   :  { %15 = vsyncpa [#allocation3 + $0x1], 0 }
   0x4   :  { %16 = vsyncpa [#allocation6], 0 }
   0x5   :  { %18 = vsyncpa [#allocation6 + $0x1], 0 }
   0x6   :  { %19 = vsyncpa [#allocation4], 0 }
   0x7   :  { %21 = vsyncpa [#allocation4 + $0x1], 0 }
   0x8   :  { %22 = vsyncpa [#allocation10], 0 }
   0x9   :  { %24 = vsyncpa [#allocation10 + $0x1], 0 }
   0xa   :  { %25 = vsyncpa [#allocation13], 0 }
   0xb   :  { %27 = vsyncpa [#allocation13 + $0x1], 0  ;;  %s1543_s24 = smov 0   ;;  %s1545_s25 = smov 0  }
   0xc   :  { %s1547_s26 = smov 0   ;;  %s1549_s27 = smov 0  }
   0xd   :  { %s1551_s28 = smov 0   ;;  %s1553_s29 = smov 0  }
   0xe LB: > { %1946 = sst [smem:[#allocation20_spill]] %s1478_s26  ;;  %s1574_s30 = sadd.s32 4294967295, %s1490_s29   ;;  %s1490_s29 = sphi %s1553_s29, %s33_s29   ;;  %s1486_s28 = sphi %s1551_s28, %s1972_s28   ;;  %s1482_s27 = sphi %s1549_s27, %s1971_s27   ;;  %s1478_s26 = sphi %s1547_s26, %s1970_s26   ;;  %s1474_s25 = sphi %s1545_s25, %s1974_s25   ;;  %s1470_s24 = sphi %s1543_s24, %s1973_s24  }
   0xf   : > { %1947 = sst [smem:[#allocation21_spill]] %s1486_s28  ;;  %s1939_s8 = sadd.s32 4294967294, %s1490_s29  }
  0x10   : > { %p74_p0 = scmp.ne.s32.totalorder %s1474_s25, %s1470_s24  ;;  %p1936_p1 = scmp.eq.s32.totalorder %s1574_s30, 0 }
  0x11   : > { %p183_p3 = scmp.eq.s32.totalorder %s1939_s8, 1  ;;  %p1022_p5 = scmp.ge.s32.totalorder %s1490_s29, 1 }
  0x12   : > { %p1585_p4 = por %p1936_p1, %p74_p0  ;;  %p280_p7 = scmp.lt.s32.totalorder %s1490_s29, 3 }
  0x13   : > { %p1590_p6 = por %p183_p3, %p74_p0  ;;  %s1492_s12 = smov [#allocation7]  }
  0x14   : > { %s1948_s9 = scalar_select %p1585_p4, 1, 0 }
  0x15   : > { %s1949_s10 = scalar_select %p1590_p6, 1, 0 }
  0x16   : > { %p1595_p8 = pnand %p1022_p5, %p280_p7  ;;  %s297_s13 = sshll.u32 %s1492_s12, 4  ;;  %s298_s13 = int_to_ptr.vmem [resolvable:$true] %s297_s13 }
  0x17   : > { %1950 = sst [smem:[#allocation22_spill]] %s1949_s10  ;;  %s52_s15 = sadd.s32 1, %s1486_s28 }
  0x18   : > { %s1951_s11 = scalar_select %p1595_p8, 1, 0 }
  0x19   : > { %p1127_p9 = pneg %p1595_p8  ;;  %s1953_s3 = sld [smem:[#allocation25_spill]] }
  0x1b   : > { %p1604_p11 = pnand %p1127_p9, %p1936_p1 }
  0x1d   : > { %p1222_p13 = pneg %p1604_p11 }
  0x1f   : > { %s1220_s18 = scalar_lea.hbm %s1953_s3, 1024 }
  0x20   : > { %p1221_p12 = scmp.ne.s32.totalorder %s1953_s3, %s1220_s18  ;;  %p1227_p5 = scmp.lt.u32.totalorder %s1220_s18, %s1953_s3 }
  0x22   : > { %p1223_p0 = pnand %p1222_p13, %p1221_p12 }
  0x24   : > { %p1224_p3 = pneg %p1223_p0 }
  0x26   : > { %p1229_p7 = pnand %p1227_p5, %p1224_p3 }
  0x28   : > { %1232 = shalt.err (!%p1229_p7)
}
  0x29   : > { %s1233_s23 = scalar_lea.vmem %s298_s13, 1024  ;;  %p1241_p2 = scmp.lt.s32.totalorder %s298_s13, %s298_s13 }
  0x2a   : > { %p1234_p9 = scmp.ne.s32.totalorder %s298_s13, %s1233_s23  ;;  %p1242_p6 = scmp.lt.s32.totalorder %s1233_s23, %s1233_s23 }
  0x2c   : > { %p1236_p10 = pnand %p1234_p9, %p1222_p13  ;;  %p1243_p4 = por %p1242_p6, %p1241_p2 }
  0x2e   : > { %p1237_p1 = pneg %p1236_p10 }
  0x30   : > { %p1244_p8 = pnand %p1243_p4, %p1237_p1 }
  0x32   : > { %1247 = shalt.err (!%p1244_p8)
}
  0x33   : > { %s1493_s12 = smov 64   ;;  %s1494_s16 = smov 4  }
  0x34   : > { %1130 = dma.hbm_to_vmem [thread:$0]  (!%p1604_p11), %s1953_s3, 1024, %s298_s13, [#allocation6], %s1493_s12, %s1493_s12, %s1494_s16  }
  0x35   : > { %p54_p1 = scmp.ge.s32.totalorder %s52_s15, 2  ;;  %s61_s19 = sadd.s32 1, %s1478_s26 }
  0x36   : > { %p68_p2 = scmp.ne.s32.totalorder %s1478_s26, %s1474_s25  ;;  %p69_p4 = scmp.eq.s32.totalorder %s1490_s29, 0 }
  0x37   : > { %s1976_s15 = smov (%p54_p1, %s52_s15), 0  ;;  %p1956_p8 = scmp.eq.s32.totalorder %s1574_s30, 1 }
  0x38   : > { %1954 = sst [smem:[#allocation23_spill]] %s1976_s15  ;;  %p1631_p6 = por %p69_p4, %p68_p2 }
  0x39   : > { %p1637_p10 = por %p1956_p8, %p68_p2  ;;  %s56_s21 = ssub.s32 %s1486_s28, %s1976_s15 }
  0x3a   : > { %p1152_p11 = scmp.lt.s32.totalorder %s1490_s29, 2  ;;  %p59_p12 = scmp.eq.s32.totalorder %s56_s21, 0 }
  0x3b   : > { %s1957_s14 = scalar_select %p1637_p10, 1, 0 }
  0x3c   : > { %s311_s13 = sand.u32 1, %s1478_s26   ;;  %s1026_s12 = sshll.u32 %s1486_s28, 6 }
  0x3d   : > { %s1645_s22 = sshll.u32 %s311_s13, 2  ;;  %s1654_s18 = scalar_lea.hbm %s1928_s0, %s1026_s12 }
  0x3e   : > { %s1648_s23 = scalar_select %p59_p12, %s1478_s26, %s61_s19  }
  0x3f   : > { %s315_s8 = scalar_lea.vmem [#allocation2], %s1645_s22  ;;  %p1661_p13 = pnand %p1152_p11, %p1631_p6 }
  0x40   : > { %1958 = sst [smem:[#allocation24_spill]] %s1648_s23  ;;  %s323_s3 = sshll.u32 %s315_s8, 4  ;;  %s1657_s3 = int_to_ptr.vmem [resolvable:$true] %s323_s3 }
  0x41   : > { %s1668_s16 = scalar_lea.hbm %s1929_s1, %s1026_s12  ;;  %s330_s17 = sand.u32 1, %s1490_s29  }
  0x42   : > { %s312_s28 = scalar_lea.sflag [#allocation3], %s311_s13  ;;  %s1248_s23 = scalar_lea.hbm %s1654_s18, 64 }
  0x43   : > { %p1249_p0 = scmp.ne.s32.totalorder %s1654_s18, %s1248_s23  ;;  %p1250_p3 = pneg %p1661_p13 }
  0x44   : > { %s1253_s26 = scalar_lea.hbm %s1928_s0, 128  ;;  %p1254_p9 = scmp.lt.u32.totalorder %s1654_s18, %s1928_s0 }
  0x45   : > { %p1251_p5 = pnand %p1250_p3, %p1249_p0  ;;  %p1255_p1 = scmp.lt.u32.totalorder %s1253_s26, %s1248_s23 }
  0x46   : > { %p1257_p4 = scmp.lt.u32.totalorder %s1248_s23, %s1654_s18 }
  0x47   : > { %p1252_p7 = pneg %p1251_p5  ;;  %p1256_p2 = por %p1255_p1, %p1254_p9 }
  0x49   : > { %p1258_p6 = por %p1257_p4, %p1256_p2 }
  0x4b   : > { %p1259_p8 = pnand %p1258_p6, %p1252_p7 }
  0x4d   : > { %1262 = shalt.err (!%p1259_p8)
}
  0x4e   : > { %s1263_s13 = scalar_lea.vmem %s1657_s3, 64  ;;  %s1495_s12 = smov [#allocation2]  }
  0x4f   : > { %p1264_p11 = scmp.ne.s32.totalorder %s1657_s3, %s1263_s13  ;;  %s1268_s19 = sshll.u32 %s1495_s12, 4  ;;  %s1269_s19 = int_to_ptr.vmem [resolvable:$false] %s1268_s19 }
  0x50   : > { %s1270_s10 = scalar_lea.vmem %s1269_s19, 128  ;;  %p1271_p5 = scmp.lt.s32.totalorder %s1657_s3, %s1269_s19 }
  0x51   : > { %p1266_p12 = pnand %p1264_p11, %p1250_p3  ;;  %p1272_p9 = scmp.lt.s32.totalorder %s1270_s10, %s1263_s13 }
  0x53   : > { %p1267_p0 = pneg %p1266_p12  ;;  %p1273_p1 = por %p1272_p9, %p1271_p5 }
  0x55   : > { %p1274_p2 = pnand %p1273_p1, %p1267_p0 }
  0x57   : > { %1277 = shalt.err (!%p1274_p2)
}
  0x58   : > { %1134 = dma.hbm_to_vmem [thread:$0]  (!%p1661_p13), %s1654_s18, 64, %s1657_s3, %s312_s28  }
  0x59   : > { %s334_s26 = scalar_lea.vmem [#allocation5], %s1645_s22  ;;  %s331_s8 = scalar_lea.sflag [#allocation6], %s330_s17 }
  0x5a   : > { %s342_s23 = sshll.u32 %s334_s26, 4  ;;  %s1278_s20 = scalar_lea.hbm %s1668_s16, 64  ;;  %s343_s23 = int_to_ptr.vmem [resolvable:$true] %s342_s23 }
  0x5b   : > { %p1279_p7 = scmp.ne.s32.totalorder %s1668_s16, %s1278_s20  ;;  %s1283_s12 = scalar_lea.hbm %s1929_s1, 128 }
  0x5c   : > { %p1284_p8 = scmp.lt.u32.totalorder %s1668_s16, %s1929_s1  ;;  %p1285_p11 = scmp.lt.u32.totalorder %s1283_s12, %s1278_s20 }
  0x5d   : > { %p1281_p4 = pnand %p1279_p7, %p1250_p3  ;;  %p1287_p0 = scmp.lt.u32.totalorder %s1278_s20, %s1668_s16 }
  0x5e   : > { %p1286_p12 = por %p1285_p11, %p1284_p8 }
  0x5f   : > { %p1282_p6 = pneg %p1281_p4 }
  0x60   : > { %p1288_p5 = por %p1287_p0, %p1286_p12 }
  0x62   : > { %p1289_p9 = pnand %p1288_p5, %p1282_p6 }
  0x64   : > { %1292 = shalt.err (!%p1289_p9)
}
  0x65   : > { %s1293_s3 = scalar_lea.vmem %s343_s23, 64  ;;  %s1496_s28 = smov [#allocation5]  }
  0x66   : > { %p1294_p1 = scmp.ne.s32.totalorder %s343_s23, %s1293_s3  ;;  %s1298_s22 = sshll.u32 %s1496_s28, 4  ;;  %s1299_s22 = int_to_ptr.vmem [resolvable:$false] %s1298_s22 }
  0x67   : > { %s1300_s18 = scalar_lea.vmem %s1299_s22, 128  ;;  %p1301_p4 = scmp.lt.s32.totalorder %s343_s23, %s1299_s22 }
  0x68   : > { %p1296_p2 = pnand %p1294_p1, %p1250_p3  ;;  %p1302_p10 = scmp.lt.s32.totalorder %s1300_s18, %s1293_s3 }
  0x6a   : > { %p1297_p7 = pneg %p1296_p2  ;;  %p1303_p8 = por %p1302_p10, %p1301_p4 }
  0x6c   : > { %p1304_p11 = pnand %p1303_p8, %p1297_p7 }
  0x6e   : > { %1307 = shalt.err (!%p1304_p11)
}
  0x6f   : > { %1137 = dma.hbm_to_vmem [thread:$0]  (!%p1661_p13), %s1668_s16, 64, %s343_s23, %s331_s8  }
  0x70   : > { %p1960_p6 = scmp.ne.s32.totalorder %s1951_s11, 0 }
  0x71   : > { %s1721_s17 = sand.u32 (!%p1960_p6), 1, %s1474_s25   ;;  %p1961_p10 = scmp.ne.s32.totalorder (!%p1960_p6), %s1948_s9, 0 }
  0x72   : > { %351 = sbr.rel (%p1960_p6) target bundleno = 446 (0x1be), region = 36  ;;  %s1724_s26 = sshll.u32 (!%p1960_p6), %s1721_s17, 2 }
  0x73   : > { %s354_s20 = scalar_lea.sflag (!%p1960_p6), [#allocation3], %s1721_s17  ;;  %s357_s15 = scalar_lea.vmem (!%p1960_p6), [#allocation2], %s1724_s26 }
  0x79   : > { %1445 = dma.done.wait (%p1961_p10), %s354_s20, 64  }
  0x7a   : > { %1447 = vsyncadd (%p1961_p10), %s354_s20, 4294967232  ;;  %s362_s11 = sand.u32 1, %s1574_s30   ;;  %s366_s16 = scalar_lea.vmem [#allocation5], %s1724_s26 }
  0x7b   : > { %s363_s21 = scalar_lea.sflag [#allocation6], %s362_s11 }
  0x7c   : > { %1449 = dma.done.wait (%p1961_p10), %s363_s21, 64  }
  0x7d   : > { %1451 = vsyncadd (%p1961_p10), %s363_s21, 4294967232  ;;  %p1962_p13 = scmp.eq.s32.totalorder %s1574_s30, 0 }
  0x7f   : > { %1453 = dma.done.wait (%p1962_p13), [#allocation6], 1024   ;;  %p1963_p3 = pmov %p1962_p13 }
  0x80   : > { %v1497_v0 = vmov 0.0   ;;  %vm1498_vm0 = vmmov 0   ;;  %v1208_v1 = vld [vmem:[#allocation7 + $0x10] sm:$0xff]   ;;  %v1209_v2 = vld [vmem:[#allocation7 + $0x18] sm:$0xff]   ;;  %v1212_v10 = vld [vmem:[#allocation7] sm:$0xff]   ;;  %vm453_vm1 = vcmask 261120  }
  0x81   : > { %1455 = vsyncadd (%p1963_p3), [#allocation6], 4294966272  ;;  %1087 = vmatprep.subr.bf16.mxu1 %v1497_v0  ;;  %1091 = vmatprep.mubr.msk.bf16.mxu1 %vm1498_vm0, %v1497_v0  ;;  %v422_v3 = vld [vmem:[%s357_s15] sm:$0xf]  ;;  %v424_v4 = vld [vmem:[%s366_s16] sm:$0xf] }
  0x82   : > { %1079 = vmatprep.subr.bf16.mxu0 %v1497_v0  ;;  %1083 = vmatprep.mubr.msk.bf16.mxu0 %vm1498_vm0, %v1497_v0  ;;  %v423_v5 = vunpack.c.l.bf16 %v422_v3  ;;  %v425_v6 = vunpack.c.l.bf16 %v424_v4  ;;  %v1042_v7 = vld [vmem:[%s1930_s2 + $0x1] ss:$0 sm:$0xff]  ;;  %v1052_v9 = vld [vmem:[%s1930_s2 + $0x3] ss:$0 sm:$0xff]  ;;  %v1037_v12 = vld [vmem:[%s1930_s2] ss:$0 sm:$0xff] }
  0x83   : > { %1088 = vmatpush3.bf16.msra.mxu1 %v1208_v1  ;;  %1080 = vmatpush3.bf16.msra.mxu0 %v1212_v10  ;;  %v1213_v13 = vld [vmem:[#allocation7 + $0x8] sm:$0xff]   ;;  %v1047_v17 = vld [vmem:[%s1930_s2 + $0x2] ss:$0 sm:$0xff]  ;;  %v1214_v23 = vld [vmem:[#allocation7 + $0x20] sm:$0xff]   ;;  %s1765_s28 = sshll.u32 %s1482_s27, 6  ;;  %s406_s22 = scalar_lea.vmem [#allocation9], %s1724_s26 }
  0x84   : > { %1089 = vmatprep.subr.bf16.mxu1 %v1497_v0  ;;  %v426_v8 = vsub.f32 %v423_v5, %v425_v6  ;;  %1081 = vmatprep.subr.bf16.mxu0 %v1497_v0  ;;  %v1210_v18 = vld [vmem:[#allocation7 + $0x30] sm:$0xff]   ;;  %v1211_v25 = vld [vmem:[#allocation7 + $0x38] sm:$0xff]   ;;  %v1215_v27 = vld [vmem:[#allocation7 + $0x28] sm:$0xff]   ;;  %s772_s18 = sshll.u32 %s406_s22, 4  ;;  %vm711_vm2 = vcmask 257024   ;;  %s399_s20 = scalar_lea.vmem [#allocation8], %s1724_s26  ;;  %s1777_s18 = int_to_ptr.vmem [resolvable:$true] %s772_s18 }
  0x85   : > { %s757_s15 = sshll.u32 %s399_s20, 4  ;;  %s1775_s9 = scalar_lea.hbm %s1933_s5, %s1765_s28  ;;  %s1786_s15 = int_to_ptr.vmem [resolvable:$true] %s757_s15 }
  0x86   : > { %v505_v11 = vmul.f32 %v1042_v7, %v426_v8  ;;  %v434_v14 = vmul.f32 %v1037_v12, %v426_v8  ;;  %v647_v16 = vmul.f32 %v1052_v9, %v426_v8  ;;  %v576_v21 = vmul.f32 %v1047_v17, %v426_v8  ;;  %s1784_s8 = scalar_lea.hbm %s1932_s4, %s1765_s28  ;;  %s1790_s13 = scalar_lea.sflag [#allocation10], %s362_s11 }
  0x87   : > { %1090 = vmatpush3.bf16.msra.mxu1 %v1209_v2  ;;  %1082 = vmatpush3.bf16.msra.mxu0 %v1213_v13  ;;  %s1308_s12 = scalar_lea.vmem %s1777_s18, 64  ;;  %p1964_p0 = scmp.ne.s32.totalorder %s1957_s14, 0 }
  0x88   : > { %1103 = vmatprep.subr.bf16.mxu1 %v1497_v0  ;;  %v506_v15 = vadd.f32 %v505_v11, %v425_v6  ;;  %v435_v19 = vadd.f32 %v434_v14, %v425_v6  ;;  %v648_v24 = vadd.f32 %v647_v16, %v425_v6  ;;  %1095 = vmatprep.subr.bf16.mxu0 %v1497_v0  ;;  %p1309_p12 = scmp.ne.s32.totalorder %s1777_s18, %s1308_s12  ;;  %s1499_s19 = smov [#allocation9]  }
  0x89   : > { %v577_v26 = vadd.f32 %v576_v21, %v425_v6  ;;  %s1312_s10 = sshll.u32 %s1499_s19, 4  ;;  %s1313_s10 = int_to_ptr.vmem [resolvable:$false] %s1312_s10 }
  0x8a   : > { %v507_v20 = vpack.c.bf16 %v506_v15, %v506_v15  ;;  %v436_v22 = vpack.c.bf16 %v435_v19, %v435_v19  ;;  %v649_v28 = vpack.c.bf16 %v648_v24, %v648_v24  ;;  %p1310_p5 = pnand %p1309_p12, %p1964_p0  ;;  %s1314_s3 = scalar_lea.vmem %s1313_s10, 128 }
  0x8b   : > { %v578_v29 = vpack.c.bf16 %v577_v26, %v577_v26  ;;  %p1315_p1 = scmp.lt.s32.totalorder %s1777_s18, %s1313_s10  ;;  %p1316_p2 = scmp.lt.s32.totalorder %s1314_s3, %s1308_s12 }
  0x8c   : > { %1092 = vmatmul.mubr.msk.bf16.vlgmr.msra.gmra.mrb[0].mxu1 %vm453_vm1, %v507_v20  ;;  %1084 = vmatmul.mubr.msk.bf16.vlgmr.msra.gmra.mrb[0].mxu0 %vm453_vm1, %v436_v22  ;;  %p1311_p9 = pneg %p1310_p5 }
  0x8d   : > { %1104 = vmatpush3.bf16.msra.mxu1 %v1210_v18  ;;  %1107 = vmatprep.mubr.msk.bf16.mxu1 %vm1498_vm0, %v1497_v0  ;;  %p1317_p7 = por %p1316_p2, %p1315_p1 }
  0x8e   : > { %1105 = vmatprep.subr.bf16.mxu1 %v1497_v0  ;;  %1096 = vmatpush3.bf16.msra.mxu0 %v1214_v23 }
  0x8f   : > { %1099 = vmatprep.mubr.msk.bf16.mxu0 %vm1498_vm0, %v1497_v0  ;;  %1097 = vmatprep.subr.bf16.mxu0 %v1497_v0  ;;  %p1318_p4 = pnand %p1317_p7, %p1311_p9 }
  0x91   : > { %1106 = vmatpush3.bf16.msra.mxu1 %v1211_v25 }
  0x92   : > { %1098 = vmatpush3.bf16.msra.mxu0 %v1215_v27 }
  0x94   : > { %1108 = vmatmul.mubr.msk.bf16.vlgmr.msra.gmra.mrb[4].mxu1 %vm453_vm1, %v649_v28 }
  0x95   : > { %1100 = vmatmul.mubr.msk.bf16.vlgmr.msra.gmra.mrb[4].mxu0 %vm453_vm1, %v578_v29 }
 0x15f   : > { %v562_v30 = vpop.f32.mrb[0].mxu1  ;;  %v491_v34 = vpop.f32.mrb[0].mxu0 }
 0x160   : > { %v713_v31 = vpack.c.bf16 %v562_v30, %v562_v30  ;;  %v1093_v32 = vpop.f32.mrb[1].mxu1  ;;  %v710_v36 = vpack.c.bf16 %v491_v34, %v491_v34  ;;  %v1085_v37 = vpop.f32.mrb[1].mxu0 }
 0x161   : > { %v565_v33 = vpop.f32.mrb[2].mxu1  ;;  %v494_v38 = vpop.f32.mrb[2].mxu0 }
 0x162   : > { %v1094_v35 = vpop.f32.mrb[3].mxu1  ;;  %714 = vst.msk [vmem:[%s406_s22] sm:$0xf] %vm711_vm2, %v713_v31 }
 0x163   : > { %1321 = shalt.err (!%p1318_p4)
}
 0x164   : > { %s1322_s30 = scalar_lea.hbm %s1775_s9, 64  ;;  %s1326_s21 = scalar_lea.hbm %s1933_s5, 128 }
 0x165   : > { %p1323_p8 = scmp.ne.s32.totalorder %s1775_s9, %s1322_s30  ;;  %p1327_p10 = scmp.lt.u32.totalorder %s1775_s9, %s1933_s5 }
 0x166   : > { %p1328_p13 = scmp.lt.u32.totalorder %s1326_s21, %s1322_s30  ;;  %p1330_p12 = scmp.lt.u32.totalorder %s1322_s30, %s1775_s9 }
 0x167   : > { %p1324_p11 = pnand %p1323_p8, %p1964_p0 }
 0x168   : > { %p1329_p3 = por %p1328_p13, %p1327_p10 }
 0x169   : > { %p1325_p6 = pneg %p1324_p11 }
 0x16a   : > { %p1331_p5 = por %p1330_p12, %p1329_p3 }
 0x16c   : > { %p1332_p9 = pnand %p1331_p5, %p1325_p6 }
 0x16e   : > { %1335 = shalt.err (!%p1332_p9)
}
 0x16f   : > { %1120 = dma.vmem_to_hbm [thread:$0]  (%p1964_p0), %s1777_s18, 64, %s1775_s9, %s1790_s13   ;;  %v1086_v39 = vpop.f32.mrb[3].mxu0  ;;  %712 = vst.msk [vmem:[%s399_s20] sm:$0xf] %vm711_vm2, %v710_v36 }
 0x170   : > { %s727_s23 = scalar_lea.sflag [#allocation4], %s1721_s17  ;;  %s1336_s12 = scalar_lea.vmem %s1786_s15, 64 }
 0x171   : > { %p1337_p1 = scmp.ne.s32.totalorder %s1786_s15, %s1336_s12  ;;  %s1500_s19 = smov [#allocation8]  }
 0x172   : > { %s1340_s10 = sshll.u32 %s1500_s19, 4  ;;  %s1341_s10 = int_to_ptr.vmem [resolvable:$false] %s1340_s10 }
 0x173   : > { %p1338_p2 = pnand %p1337_p1, %p1964_p0  ;;  %s1342_s3 = scalar_lea.vmem %s1341_s10, 128 }
 0x174   : > { %p1343_p4 = scmp.lt.s32.totalorder %s1786_s15, %s1341_s10  ;;  %p1344_p8 = scmp.lt.s32.totalorder %s1342_s3, %s1336_s12 }
 0x175   : > { %p1339_p7 = pneg %p1338_p2 }
 0x176   : > { %p1345_p11 = por %p1344_p8, %p1343_p4 }
 0x178   : > { %p1346_p6 = pnand %p1345_p11, %p1339_p7 }
 0x17a   : > { %1349 = shalt.err (!%p1346_p6)
}
 0x17b   : > { %s1350_s18 = scalar_lea.hbm %s1784_s8, 64  ;;  %s1354_s30 = scalar_lea.hbm %s1932_s4, 128 }
 0x17c   : > { %p1351_p10 = scmp.ne.s32.totalorder %s1784_s8, %s1350_s18  ;;  %p1355_p12 = scmp.lt.u32.totalorder %s1784_s8, %s1932_s4 }
 0x17d   : > { %p1356_p5 = scmp.lt.u32.totalorder %s1354_s30, %s1350_s18  ;;  %p1358_p1 = scmp.lt.u32.totalorder %s1350_s18, %s1784_s8 }
 0x17e   : > { %p1352_p13 = pnand %p1351_p10, %p1964_p0 }
 0x17f   : > { %p1357_p9 = por %p1356_p5, %p1355_p12 }
 0x180   : > { %p1353_p3 = pneg %p1352_p13 }
 0x181   : > { %p1359_p2 = por %p1358_p1, %p1357_p9 }
 0x183   : > { %p1360_p7 = pnand %p1359_p2, %p1353_p3 }
 0x185   : > { %1363 = shalt.err (!%p1360_p7)
}
 0x186   : > { %1119 = dma.vmem_to_hbm [thread:$0]  (%p1964_p0), %s1786_s15, 64, %s1784_s8, %s727_s23   ;;  %v704_v40 = vpop.f32.mrb[4].mxu1  ;;  %v633_v44 = vpop.f32.mrb[4].mxu0 }
 0x187   : > { %s413_s21 = scalar_lea.vmem [#allocation11], %s1724_s26  ;;  %v1056_v41 = vmul.f32 -1.442695, %v704_v40  ;;  %v1109_v42 = vpop.f32.mrb[5].mxu1  ;;  %v715_v46 = vpack.c.bf16 %v633_v44, %v633_v44  ;;  %v1101_v47 = vpop.f32.mrb[5].mxu0  ;;  %s1844_s19 = scalar_lea.hbm %s1934_s6, %s1765_s28 }
 0x188   : > { %s787_s16 = sshll.u32 %s413_s21, 4  ;;  %v707_v43 = vpop.f32.mrb[6].mxu1  ;;  %v636_v48 = vpop.f32.mrb[6].mxu0  ;;  %s1501_s8 = smov [#allocation11]   ;;  %s1846_s16 = int_to_ptr.vmem [resolvable:$true] %s787_s16 }
 0x189   : > { %1216 = vpow2.f32 %v1056_v41  ;;  %v1110_v45 = vpop.f32.mrb[7].mxu1  ;;  %v1102_v49 = vpop.f32.mrb[7].mxu0  ;;  %716 = vst.msk [vmem:[%s413_s21] sm:$0xf] %vm711_vm2, %v715_v46  ;;  %s1364_s15 = scalar_lea.vmem %s1846_s16, 64  ;;  %s1368_s23 = sshll.u32 %s1501_s8, 4  ;;  %s1369_s23 = int_to_ptr.vmem [resolvable:$false] %s1368_s23 }
 0x18a   : > { %p1365_p4 = scmp.ne.s32.totalorder %s1846_s16, %s1364_s15  ;;  %s1370_s10 = scalar_lea.vmem %s1369_s23, 128 }
 0x18b   : > { %p1371_p6 = scmp.lt.s32.totalorder %s1846_s16, %s1369_s23  ;;  %p1372_p10 = scmp.lt.s32.totalorder %s1370_s10, %s1364_s15 }
 0x18c   : > { %p1366_p8 = pnand %p1365_p4, %p1964_p0 }
 0x18d   : > { %p1373_p13 = por %p1372_p10, %p1371_p6 }
 0x18e   : > { %p1367_p11 = pneg %p1366_p8 }
 0x190   : > { %p1374_p3 = pnand %p1373_p13, %p1367_p11 }
 0x192   : > { %1377 = shalt.err (!%p1374_p3)
}
 0x193   : > { %s1378_s3 = scalar_lea.hbm %s1844_s19, 64  ;;  %s1382_s9 = scalar_lea.hbm %s1934_s6, 128 }
 0x194   : > { %p1379_p12 = scmp.ne.s32.totalorder %s1844_s19, %s1378_s3  ;;  %p1383_p1 = scmp.lt.u32.totalorder %s1844_s19, %s1934_s6 }
 0x195   : > { %p1384_p2 = scmp.lt.u32.totalorder %s1382_s9, %s1378_s3  ;;  %p1386_p4 = scmp.lt.u32.totalorder %s1378_s3, %s1844_s19 }
 0x196   : > { %p1380_p5 = pnand %p1379_p12, %p1964_p0 }
 0x197   : > { %p1385_p7 = por %p1384_p2, %p1383_p1 }
 0x198   : > { %p1381_p9 = pneg %p1380_p5 }
 0x199   : > { %p1387_p8 = por %p1386_p4, %p1385_p7 }
 0x19b   : > { %p1388_p11 = pnand %p1387_p8, %p1381_p9 }
 0x19d   : > { %1391 = shalt.err (!%p1388_p11)
}
 0x19e   : > { %1121 = dma.vmem_to_hbm [thread:$0]  (%p1964_p0), %s1846_s16, 64, %s1844_s19, %s1790_s13   ;;  %v1217_v50 = vpop.eup %1216 }
 0x19f   : > { %v720_v51 = vadd.f32 1.0, %v1217_v50  ;;  %s420_s22 = scalar_lea.vmem [#allocation12], %s1724_s26  ;;  %s1876_s15 = scalar_lea.hbm %s1935_s7, %s1765_s28 }
 0x1a0   : > { %s802_s21 = sshll.u32 %s420_s22, 4  ;;  %s742_s13 = scalar_lea.sflag [#allocation13], %s1721_s17  ;;  %s1878_s21 = int_to_ptr.vmem [resolvable:$true] %s802_s21 }
 0x1a1   : > { %1218 = vrcp.f32 %v720_v51  ;;  %s1392_s16 = scalar_lea.vmem %s1878_s21, 64  ;;  %s1502_s26 = smov [#allocation12]  }
 0x1a2   : > { %p1393_p6 = scmp.ne.s32.totalorder %s1878_s21, %s1392_s16  ;;  %s1396_s19 = sshll.u32 %s1502_s26, 4  ;;  %s1397_s19 = int_to_ptr.vmem [resolvable:$false] %s1396_s19 }
 0x1a3   : > { %s1398_s8 = scalar_lea.vmem %s1397_s19, 128  ;;  %p1399_p3 = scmp.lt.s32.totalorder %s1878_s21, %s1397_s19 }
 0x1a4   : > { %p1394_p10 = pnand %p1393_p6, %p1964_p0  ;;  %p1400_p12 = scmp.lt.s32.totalorder %s1398_s8, %s1392_s16 }
 0x1a6   : > { %p1395_p13 = pneg %p1394_p10  ;;  %p1401_p5 = por %p1400_p12, %p1399_p3 }
 0x1a8   : > { %p1402_p9 = pnand %p1401_p5, %p1395_p13 }
 0x1ab   : > { %v1219_v52 = vpop.eup %1218 }
 0x1ac   : > { %v723_v53 = vmul.f32 %v1219_v52, %v704_v40 }
 0x1ae   : > { %v724_v54 = vpack.c.bf16 %v723_v53, %v723_v53 }
 0x1b0   : > { %725 = vst.msk [vmem:[%s420_s22] sm:$0xf] %vm711_vm2, %v724_v54 }
 0x1b1   : > { %1405 = shalt.err (!%p1402_p9)
}
 0x1b2   : > { %s1406_s17 = scalar_lea.hbm %s1876_s15, 64  ;;  %s1410_s10 = scalar_lea.hbm %s1935_s7, 128 }
 0x1b3   : > { %p1407_p1 = scmp.ne.s32.totalorder %s1876_s15, %s1406_s17  ;;  %p1411_p4 = scmp.lt.u32.totalorder %s1876_s15, %s1935_s7 }
 0x1b4   : > { %p1412_p8 = scmp.lt.u32.totalorder %s1410_s10, %s1406_s17  ;;  %p1414_p6 = scmp.lt.u32.totalorder %s1406_s17, %s1876_s15 }
 0x1b5   : > { %p1408_p2 = pnand %p1407_p1, %p1964_p0 }
 0x1b6   : > { %p1413_p11 = por %p1412_p8, %p1411_p4 }
 0x1b7   : > { %p1409_p7 = pneg %p1408_p2 }
 0x1b8   : > { %p1415_p10 = por %p1414_p6, %p1413_p11 }
 0x1ba   : > { %p1416_p13 = pnand %p1415_p10, %p1409_p7 }
 0x1bc   : > { %1419 = shalt.err (!%p1416_p13)
}
 0x1bd   : > { %1122 = dma.vmem_to_hbm [thread:$0]  (%p1964_p0), %s1878_s21, 64, %s1876_s15, %s742_s13  }
 0x1be PF: > { %s1965_s20 = sld [smem:[#allocation22_spill]]  ;;  %s814_s9 = sand.u32 1, %s1470_s24  }
 0x1bf   : > { %p1967_p12 = scmp.ge.s32.totalorder %s1490_s29, 2  ;;  %s815_s30 = scalar_lea.sflag [#allocation4], %s814_s9 }
 0x1c4   : > { %p1966_p3 = scmp.ne.s32.totalorder %s1965_s20, 0 }
 0x1c6   : > { %p1139_p5 = pnand %p1967_p12, %p1966_p3 }
 0x1c8   : > { %1457 = dma.done.wait (!%p1139_p5), %s815_s30, 64  }
 0x1c9   : > { %1459 = vsyncadd (!%p1139_p5), %s815_s30, 4294967232  ;;  %s1968_s11 = sadd.s32 4294967294, %s1490_s29  }
 0x1ca   : > { %s823_s22 = sand.u32 1, %s1968_s11  }
 0x1cb   : > { %s824_s27 = scalar_lea.sflag [#allocation10], %s823_s22 }
 0x1cc   : > { %1461 = dma.done.wait (!%p1139_p5), %s824_s27, 128  }
 0x1cd   : > { %1463 = vsyncadd (!%p1139_p5), %s824_s27, 4294967168  ;;  %s842_s14 = scalar_lea.sflag [#allocation13], %s814_s9 }
 0x1ce   : > { %1465 = dma.done.wait (!%p1139_p5), %s842_s14, 64  }
 0x1cf   : > { %1467 = vsyncadd (!%p1139_p5), %s842_s14, 4294967232  ;;  %s33_s29 = sadd.s32 1, %s1490_s29   ;;  %s1969_s21 = sld [smem:[#allocation20_spill]] }
 0x1d0   : > { %p30_p0 = scmp.ge.s32.totalorder %s33_s29, 4   ;;  %s1970_s26 = sld [smem:[#allocation24_spill]] }
 0x1d1   : > { %s1971_s27 = sld [smem:[#allocation21_spill]]  ;;  %s1972_s28 = sld [smem:[#allocation23_spill]] }
 0x1d2   : > { %s1973_s24 = smov %s1474_s25  ;;  %32 = sbr.rel (!%p30_p0) target bundleno = 14 (0xe), region = 154 }
 0x1d5   : > { %s1974_s25 = smov %s1969_s21 }
 0x1d9   :  { %847 = vsyncpa [#allocation3], 1 }
 0x1da   :  { %849 = vsyncpa [#allocation3 + $0x1], 1 }
 0x1db   :  { %850 = vsyncpa [#allocation6], 1 }
 0x1dc   :  { %852 = vsyncpa [#allocation6 + $0x1], 1 }
 0x1dd   :  { %853 = vsyncpa [#allocation4], 1 }
 0x1de   :  { %855 = vsyncpa [#allocation4 + $0x1], 1 }
 0x1df   :  { %856 = vsyncpa [#allocation10], 1 }
 0x1e0   :  { %858 = vsyncpa [#allocation10 + $0x1], 1 }
 0x1e1   :  { %859 = vsyncpa [#allocation13], 1 }
 0x1e2   :  { %861 = vsyncpa [#allocation13 + $0x1], 1 }

</bundles_post_ra>
